<compile_context>
chip_gen: v5e
topology: v5e:2x2
jax: 0.10.0
libtpu: 0.0.40
codegen_flags: <defaults>
</compile_context>

<pallas_src>
import functools

import jax
import jax.numpy as jnp
import numpy as np
from jax.experimental import pallas as pl
from jax.experimental.pallas import tpu as pltpu


def _mse_softmax_kernel(x_ref, t_ref, out_ref, acc_ref, *, hw, tile_p, need_mask):
    j = pl.program_id(1)

    @pl.when(j == 0)
    def _():
        acc_ref[...] = jnp.zeros_like(acc_ref)

    x = x_ref[...].astype(jnp.float32)      # (C, TILE_P): channels on sublanes
    t = t_ref[...].astype(jnp.float32)      # (C, TILE_P)

    # numerically stable softmax over the channel (sublane) axis
    m = jnp.max(x, axis=0, keepdims=True)   # (1, TILE_P)
    e = jnp.exp(x - m)
    s = jnp.sum(e, axis=0, keepdims=True)
    sm = e / s

    d = sm - t
    sq = d * d                              # (C, TILE_P)

    if need_mask:
        # last pixel tile may hang over the end of H*W: zero those columns
        lane = jax.lax.broadcasted_iota(jnp.int32, sq.shape, 1)
        sq = jnp.where(j * tile_p + lane < hw, sq, 0.0)

    acc_ref[...] += sq                      # pure elementwise VPU accumulate

    @pl.when(j == pl.num_programs(1) - 1)
    def _():
        # single cross-lane/sublane reduce per batch element, lane-dense store
        out_ref[...] = jnp.zeros_like(out_ref) + jnp.sum(acc_ref[...])


def mse_loss_2d(output, target, *, tile_p=None):
    """MSELoss2d.forward: mean((softmax(output, axis=1) - target) ** 2)."""
    N, C, H, W = output.shape
    assert target.shape == output.shape, (output.shape, target.shape)
    HW = H * W

    x = output.reshape(N, C, HW)   # free view of NCHW (no transpose pass)
    t = target.reshape(N, C, HW)

    if tile_p is None:
        # biggest pixel tile whose double-buffered inputs + f32 accumulator
        # stay around 16 MiB (safe under the scoped-VMEM default, incl. v7x)
        budget = 16 * 1024 * 1024
        bytes_per_col = 2 * C * (x.dtype.itemsize + t.dtype.itemsize) + 4 * C
        tile_p = min(8192, max(128, (budget // bytes_per_col) // 128 * 128))
    if HW <= tile_p:
        tile_p = HW                # full-extent lane dim is always legal
    num_tiles = pl.cdiv(HW, tile_p)

    kernel = functools.partial(
        _mse_softmax_kernel, hw=HW, tile_p=tile_p,
        need_mask=(HW % tile_p != 0))

    partials = pl.pallas_call(
        kernel,
        out_shape=jax.ShapeDtypeStruct((N, 8, 128), jnp.float32),
        grid=(N, num_tiles),
        in_specs=[
            pl.BlockSpec((None, C, tile_p), lambda n, j: (n, 0, j)),
            pl.BlockSpec((None, C, tile_p), lambda n, j: (n, 0, j)),
        ],
        out_specs=pl.BlockSpec((None, 8, 128), lambda n, j: (n, 0, 0)),
        scratch_shapes=[pltpu.VMEM((C, tile_p), jnp.float32)],
        compiler_params=pltpu.CompilerParams(
            dimension_semantics=("parallel", "arbitrary")),
    )(x, t)

    # tiny final reduction + 'mean' normalization outside the kernel
    return jnp.sum(partials[:, 0, 0]) / (N * C * H * W)


if __name__ == "__main__":
    key = jax.random.PRNGKey(0)
    k1, k2 = jax.random.split(key, 2)

    N, C, H, W = 2, 4, 16, 16
    output = jax.random.normal(k1, (N, C, H, W), dtype=jnp.float32)
    # target is a per-pixel probability map with the same shape as softmax(output)
    target = jax.nn.softmax(
        jax.random.normal(k2, (N, C, H, W), dtype=jnp.float32), axis=1)

    loss = mse_loss_2d(output, target)
    loss = jax.block_until_ready(loss)

    # pure-JAX reference: torch.nn.MSELoss('mean')(softmax(output, 1), target)
    ref = jnp.mean((jax.nn.softmax(output, axis=1) - target) ** 2)

    np.testing.assert_allclose(np.asarray(loss), np.asarray(ref),
                               rtol=1e-5, atol=1e-6)
    print("KERNEL_OK")
</pallas_src>

<mosaic_0001>
module attributes {stable_mosaic.version = 11 : i64} {
  func.func @_mse_softmax_kernel(%arg0: i32, %arg1: i32, %arg2: memref<1x4x256xf32, #tpu.memory_space<vmem>>, %arg3: memref<1x4x256xf32, #tpu.memory_space<vmem>>, %arg4: memref<1x8x128xf32, #tpu.memory_space<vmem>>, %arg5: memref<4x256xf32, #tpu.memory_space<vmem>>) attributes {dimension_semantics = [#tpu.dimension_semantics<parallel>, #tpu.dimension_semantics<arbitrary>], iteration_bounds = array<i64: 2, 1>, scalar_prefetch = 0 : i64, scratch_operands = 1 : i64, tpu.core_type = #tpu.core_type<tc>, window_params = [{transform_indices = @transform_0, window_bounds = array<i64: 1, 4, 256>}, {transform_indices = @transform_1, window_bounds = array<i64: 1, 4, 256>}, {transform_indices = @transform_2, window_bounds = array<i64: 1, 8, 128>}]} {
    %c0_i32 = arith.constant 0 : i32
    %0 = arith.cmpi eq, %arg1, %c0_i32 : i32
    %1 = arith.extui %0 : i1 to i32
    %c0_i32_0 = arith.constant 0 : i32
    %2 = arith.cmpi ne, %1, %c0_i32_0 : i32
    scf.if %2 {
      %cst_13 = arith.constant 0.000000e+00 : f32
      %24 = vector.broadcast %cst_13 : f32 to vector<4x256xf32>
      %c0_14 = arith.constant 0 : index
      %c0_15 = arith.constant 0 : index
      %25 = vector.load %arg5[%c0_14, %c0_15] : memref<4x256xf32, #tpu.memory_space<vmem>>, vector<4x256xf32>
      tpu.vector_store %arg5[%c0_14, %c0_15], %24 {strides = array<i32>} : memref<4x256xf32, #tpu.memory_space<vmem>>, vector<4x256xf32>,
    } else {
    }
    %c0 = arith.constant 0 : index
    %c0_1 = arith.constant 0 : index
    %c0_2 = arith.constant 0 : index
    %3 = vector.load %arg2[%c0, %c0_1, %c0_2] : memref<1x4x256xf32, #tpu.memory_space<vmem>>, vector<1x4x256xf32>
    %4 = vector.shape_cast %3 : vector<1x4x256xf32> to vector<4x256xf32>
    %c0_3 = arith.constant 0 : index
    %c0_4 = arith.constant 0 : index
    %c0_5 = arith.constant 0 : index
    %5 = vector.load %arg3[%c0_3, %c0_4, %c0_5] : memref<1x4x256xf32, #tpu.memory_space<vmem>>, vector<1x4x256xf32>
    %6 = vector.shape_cast %5 : vector<1x4x256xf32> to vector<4x256xf32>
    %cst = arith.constant dense<0xFF800000> : vector<256xf32>
    %7 = vector.multi_reduction <maximumf>, %4, %cst [0] : vector<4x256xf32> to vector<256xf32>
    %8 = vector.shape_cast %7 : vector<256xf32> to vector<1x256xf32>
    %9 = vector.broadcast %8 : vector<1x256xf32> to vector<4x256xf32>
    %10 = arith.subf %4, %9 : vector<4x256xf32>
    %11 = math.exp %10 : vector<4x256xf32>
    %cst_6 = arith.constant dense<0.000000e+00> : vector<256xf32>
    %12 = vector.multi_reduction <add>, %11, %cst_6 [0] : vector<4x256xf32> to vector<256xf32>
    %13 = vector.shape_cast %12 : vector<256xf32> to vector<1x256xf32>
    %14 = vector.broadcast %13 : vector<1x256xf32> to vector<4x256xf32>
    %15 = arith.divf %11, %14 : vector<4x256xf32>
    %16 = arith.subf %15, %6 : vector<4x256xf32>
    %17 = arith.mulf %16, %16 : vector<4x256xf32>
    %c0_7 = arith.constant 0 : index
    %c0_8 = arith.constant 0 : index
    %18 = vector.load %arg5[%c0_7, %c0_8] : memref<4x256xf32, #tpu.memory_space<vmem>>, vector<4x256xf32>
    %19 = arith.addf %18, %17 : vector<4x256xf32>
    %c0_9 = arith.constant 0 : index
    %c0_10 = arith.constant 0 : index
    %20 = vector.load %arg5[%c0_9, %c0_10] : memref<4x256xf32, #tpu.memory_space<vmem>>, vector<4x256xf32>
    tpu.vector_store %arg5[%c0_9, %c0_10], %19 {strides = array<i32>} : memref<4x256xf32, #tpu.memory_space<vmem>>, vector<4x256xf32>,
    %c0_i32_11 = arith.constant 0 : i32
    %21 = arith.cmpi eq, %arg1, %c0_i32_11 : i32
    %22 = arith.extui %21 : i1 to i32
    %c0_i32_12 = arith.constant 0 : i32
    %23 = arith.cmpi ne, %22, %c0_i32_12 : i32
    scf.if %23 {
      %cst_13 = arith.constant 0.000000e+00 : f32
      %24 = vector.broadcast %cst_13 : f32 to vector<8x128xf32>
      %c0_14 = arith.constant 0 : index
      %c0_15 = arith.constant 0 : index
      %25 = vector.load %arg5[%c0_14, %c0_15] : memref<4x256xf32, #tpu.memory_space<vmem>>, vector<4x256xf32>
      %26 = vector.shape_cast %25 : vector<4x256xf32> to vector<1x4x256xf32>
      %cst_16 = arith.constant dense<0.000000e+00> : vector<1xf32>
      %27 = vector.multi_reduction <add>, %26, %cst_16 [1, 2] : vector<1x4x256xf32> to vector<1xf32>
      %28 = vector.shape_cast %27 : vector<1xf32> to vector<1x1x1xf32>
      %29 = vector.extract %28[0, 0, 0] : f32 from vector<1x1x1xf32>
      %30 = vector.broadcast %29 : f32 to vector<8x128xf32>
      %31 = arith.addf %24, %30 : vector<8x128xf32>
      %c0_17 = arith.constant 0 : index
      %c0_18 = arith.constant 0 : index
      %c0_19 = arith.constant 0 : index
      %32 = vector.load %arg4[%c0_17, %c0_18, %c0_19] : memref<1x8x128xf32, #tpu.memory_space<vmem>>, vector<1x8x128xf32>
      %33 = vector.shape_cast %32 : vector<1x8x128xf32> to vector<8x128xf32>
      %34 = vector.shape_cast %31 : vector<8x128xf32> to vector<1x8x128xf32>
      tpu.vector_store %arg4[%c0_17, %c0_18, %c0_19], %34 {strides = array<i32>} : memref<1x8x128xf32, #tpu.memory_space<vmem>>, vector<1x8x128xf32>,
    } else {
    }
    return
  }
  func.func @transform_0(%arg0: i32, %arg1: i32) -> (i32, i32, i32) {
    %c0_i32 = arith.constant 0 : i32
    %c0_i32_0 = arith.constant 0 : i32
    return %arg0, %c0_i32, %arg1 : i32, i32, i32
  }
  func.func @transform_1(%arg0: i32, %arg1: i32) -> (i32, i32, i32) {
    %c0_i32 = arith.constant 0 : i32
    %c0_i32_0 = arith.constant 0 : i32
    return %arg0, %c0_i32, %arg1 : i32, i32, i32
  }
  func.func @transform_2(%arg0: i32, %arg1: i32) -> (i32, i32, i32) {
    %c0_i32 = arith.constant 0 : i32
    %c0_i32_0 = arith.constant 0 : i32
    %c0_i32_1 = arith.constant 0 : i32
    return %arg0, %c0_i32, %c0_i32_0 : i32, i32, i32
  }
}

</mosaic_0001>

<bundles_post_ra>
// kernel: tpu_custom_call.1
= control target key start
LH: loop header
LB: loop body
LE: loop exit
PB: predicated region body
PF: predicated region fallthrough
CT: control target
= control target key end

     0   :  { %7 = vsyncpa [#allocation4], 0  ;;  %s852_s0 = inlined_call_operand.hbm [shape: f32[2,4,256], index: 0, kind: input, shape index: {}]   ;;  %s853_s1 = inlined_call_operand.hbm [shape: f32[2,4,256], index: 1, kind: input, shape index: {}]   ;;  %s854_s2 = inlined_call_operand.hbm [shape: f32[2,8,128], index: 2, kind: output, shape index: {}]  }
   0x1   :  { %9 = vsyncpa [#allocation4 + $0x1], 0 }
   0x2   :  { %10 = vsyncpa [#allocation7], 0 }
   0x3   :  { %12 = vsyncpa [#allocation7 + $0x1], 0 }
   0x4   :  { %13 = vsyncpa [#allocation5], 0 }
   0x5   :  { %15 = vsyncpa [#allocation5 + $0x1], 0  ;;  %s709_s9 = smov 0   ;;  %s711_s10 = smov 0  }
   0x6   :  { %s713_s11 = smov 0   ;;  %s715_s12 = smov 0  }
   0x7   :  { %s717_s13 = smov 0   ;;  %s719_s14 = smov 0  }
   0x8 LB: > { %s453_s15 = sadd.s32 4294967295, %s692_s14   ;;  %s454_s16 = sadd.s32 4294967294, %s692_s14   ;;  %s692_s14 = sphi %s719_s14, %s21_s14   ;;  %s688_s13 = sphi %s717_s13, %s863_s13   ;;  %s684_s12 = sphi %s715_s12, %s862_s12   ;;  %s680_s11 = sphi %s713_s11, %s861_s11   ;;  %s676_s10 = sphi %s711_s10, %s860_s10   ;;  %s672_s9 = sphi %s709_s9, %s859_s9  }
   0x9   : > { %s33_s17 = sadd.s32 1, %s688_s13  ;;  %s42_s18 = sadd.s32 1, %s680_s11 }
   0xa   : > { %p35_p0 = scmp.ge.s32.totalorder %s33_s17, 2  ;;  %p49_p1 = scmp.ne.s32.totalorder %s680_s11, %s676_s10 }
   0xb   : > { %p50_p2 = scmp.eq.s32.totalorder %s692_s14, 0  ;;  %p55_p3 = scmp.ne.s32.totalorder %s676_s10, %s672_s9 }
   0xc   : > { %s865_s17 = smov (%p35_p0, %s33_s17), 0  ;;  %p56_p5 = scmp.eq.s32.totalorder %s453_s15, 0 }
   0xd   : > { %p750_p4 = por %p50_p2, %p49_p1  ;;  %s37_s20 = ssub.s32 %s688_s13, %s865_s17 }
   0xe   : > { %p107_p6 = scmp.eq.s32.totalorder %s453_s15, 1  ;;  %p40_p7 = scmp.eq.s32.totalorder %s37_s20, 0 }
   0xf   : > { %p756_p8 = por %p56_p5, %p55_p3  ;;  %p113_p10 = scmp.eq.s32.totalorder %s454_s16, 1 }
  0x10   : > { %p760_p9 = por %p107_p6, %p49_p1  ;;  %p456_p12 = scmp.ge.s32.totalorder %s692_s14, 2 }
  0x11   : > { %s765_s23 = scalar_select %p40_p7, %s680_s11, %s42_s18  }
  0x12   : > { %p767_p11 = por %p113_p10, %p55_p3  ;;  %p492_p13 = scmp.lt.s32.totalorder %s692_s14, 2 }
  0x13   : > { %s133_s25 = sand.u32 1, %s680_s11   ;;  %s471_s27 = sshll.u32 %s688_s13, 3 }
  0x14   : > { %s457_s26 = sshll.u32 %s133_s25, 3  ;;  %s144_s30 = scalar_lea.hbm %s852_s0, %s471_s27 }
  0x15   : > { %s137_s3 = scalar_lea.vmem [#allocation3], %s457_s26  ;;  %s146_s5 = sshll.u32 %s144_s30, 4  ;;  %s147_s5 = int_to_ptr.hbm [resolvable:$true] %s146_s5 }
  0x16   : > { %s148_s4 = sshll.u32 %s137_s3, 4  ;;  %p482_p0 = pnand %p492_p13, %p750_p4  ;;  %s149_s4 = int_to_ptr.vmem [resolvable:$true] %s148_s4 }
  0x17   : > { %p463_p1 = scmp.ge.s32.totalorder %s692_s14, 1  ;;  %p175_p2 = scmp.lt.s32.totalorder %s692_s14, 3 }
  0x18   : > { %s134_s6 = scalar_lea.sflag [#allocation4], %s133_s25  ;;  %s166_s15 = scalar_lea.hbm %s853_s1, %s471_s27 }
  0x19   : > { %484 = dma.hbm_to_vmem [thread:$0]  (!%p482_p0), %s147_s5, 128, %s149_s4, %s134_s6  }
  0x1a   : > { %p176_p3 = pnand %p463_p1, %p175_p2  ;;  %s159_s16 = scalar_lea.vmem [#allocation6], %s457_s26 }
  0x1b   : > { %s170_s18 = sshll.u32 %s159_s16, 4  ;;  %s168_s20 = sshll.u32 %s166_s15, 4  ;;  %s171_s18 = int_to_ptr.vmem [resolvable:$true] %s170_s18  ;;  %s169_s20 = int_to_ptr.hbm [resolvable:$true] %s168_s20 }
  0x1c   : > { %s156_s28 = scalar_lea.sflag [#allocation7], %s133_s25  ;;  %179 = sbr.rel (%p176_p3) target bundleno = 312 (0x138), region = 28 }
  0x1d   : > { %487 = dma.hbm_to_vmem [thread:$0]  (!%p482_p0), %s169_s20, 128, %s171_s18, %s156_s28  }
  0x1e   : > { %s786_s19 = sand.u32 (!%p176_p3), 1, %s676_s10  }
  0x1f   : > { %s789_s29 = sshll.u32 (!%p176_p3), %s786_s19, 3  ;;  %s182_s30 = scalar_lea.sflag (!%p176_p3), [#allocation4], %s786_s19 }
  0x20   : > { %s185_s3 = scalar_lea.vmem (!%p176_p3), [#allocation3], %s789_s29 }
  0x21   : > { %659 = dma.done.wait (%p756_p8), %s182_s30, 128  }
  0x22   : > { %661 = vsyncadd (%p756_p8), %s182_s30, 4294967168  ;;  %s192_s25 = scalar_lea.sflag [#allocation7], %s786_s19  ;;  %s195_s26 = scalar_lea.vmem [#allocation6], %s789_s29 }
  0x23   : > { %663 = dma.done.wait (%p756_p8), %s192_s25, 128  }
  0x24   : > { %665 = vsyncadd (%p756_p8), %s192_s25, 4294967168  ;;  %v229_v0 = vld [vmem:[%s185_s3] sm:$0xff]  ;;  %vm237_vm0 = vcmask 1043456   ;;  %v230_v49 = vld [vmem:[%s195_s26] sm:$0xff]  ;;  %s468_s21 = sshll.u32 %s684_s12, 3  ;;  %s221_s6 = scalar_lea.vmem [#allocation8], %s789_s29 }
  0x25   : > { %232 = vst [vmem:[#allocation1] ss:$2 sm:$0xff] %v229_v0  ;;  %s341_s5 = scalar_lea.hbm %s854_s2, %s468_s21  ;;  %s343_s7 = sshll.u32 %s221_s6, 4  ;;  %s344_s7 = int_to_ptr.vmem [resolvable:$true] %s343_s7 }
  0x26   : > { %s345_s8 = sshll.u32 %s341_s5, 4  ;;  %s331_s16 = scalar_lea.sflag [#allocation5], %s786_s19  ;;  %s346_s8 = int_to_ptr.hbm [resolvable:$true] %s345_s8 }
  0x27   : > { %s620_s18 = sshra.s32 %s346_s8, 4  ;;  %s626_s30 = scalar_lea.hbm %s854_s2, 16  ;;  %s621_s18 = int_to_ptr.hbm [resolvable:$true] %s620_s18 }
  0x28   : > { %s622_s20 = scalar_lea.hbm %s621_s18, 8  ;;  %p627_p7 = scmp.lt.s32.totalorder %s621_s18, %s854_s2 }
  0x29   : > { %p623_p4 = scmp.ne.s32.totalorder %s621_s18, %s622_s20  ;;  %p628_p8 = scmp.lt.s32.totalorder %s626_s30, %s622_s20 }
  0x2b   : > { %p624_p5 = pnand %p623_p4, %p760_p9  ;;  %p629_p10 = por %p628_p8, %p627_p7 }
  0x2c   : > { %v233_v1 = vld.sshfl [vmem:[#allocation1] sm:$0xff pattern:$0x75316420]  ;;  %v234_v2 = vld.sshfl [vmem:[#allocation1 + $0x8] sm:$0xff pattern:$0x75316420] }
  0x2d   : > { %v238_v3 = vsel %vm237_vm0, %v233_v1, -inf  ;;  %v245_v4 = vsel %vm237_vm0, %v234_v2, -inf  ;;  %p625_p6 = pneg %p624_p5 }
  0x2e   : > { %v239_v5 = vrot.slane %v238_v3, 4  ;;  %v246_v6 = vrot.slane %v245_v4, 4 }
  0x2f   : > { %p630_p13 = pnand %p629_p10, %p625_p6 }
  0x30   : > { %v240_v7 = vmax.f32 %v238_v3, %v239_v5  ;;  %v247_v8 = vmax.f32 %v245_v4, %v246_v6 }
  0x32   : > { %v241_v9 = vrot.slane %v240_v7, 2  ;;  %v248_v10 = vrot.slane %v247_v8, 2 }
  0x34   : > { %v242_v11 = vmax.f32 %v240_v7, %v241_v9  ;;  %v249_v12 = vmax.f32 %v247_v8, %v248_v10 }
  0x36   : > { %v243_v13 = vrot.slane %v242_v11, 1  ;;  %v250_v14 = vrot.slane %v249_v12, 1 }
  0x38   : > { %v244_v15 = vmax.f32 %v242_v11, %v243_v13  ;;  %v251_v16 = vmax.f32 %v249_v12, %v250_v14 }
  0x3a   : > { %v254_v17 = vrot.slane %v251_v16, 4 }
  0x3c   : > { %v255_v18 = vsel %vm237_vm0, %v244_v15, %v254_v17 }
  0x3d   : > { %v257_v19 = vsub.f32 %v229_v0, %v255_v18 }
  0x3f   : > { %v258_v20 = vmul.f32 1.442695, %v257_v19 }
  0x41   : > { %542 = vpow2.f32 %v258_v20 }
  0x47   : > { %v543_v21 = vpop.eup %542 }
  0x48   : > { %261 = vst [vmem:[#allocation1] ss:$2 sm:$0xff] %v543_v21 }
  0x4f   : > { %v262_v22 = vld.sshfl [vmem:[#allocation1] sm:$0xff pattern:$0x75316420]  ;;  %v263_v23 = vld.sshfl [vmem:[#allocation1 + $0x8] sm:$0xff pattern:$0x75316420] }
  0x50   : > { %v266_v24 = vsel %vm237_vm0, %v262_v22, 0.0  ;;  %v273_v25 = vsel %vm237_vm0, %v263_v23, 0.0 }
  0x51   : > { %v267_v26 = vrot.slane %v266_v24, 4  ;;  %v274_v27 = vrot.slane %v273_v25, 4 }
  0x53   : > { %v268_v28 = vadd.f32 %v267_v26, %v266_v24  ;;  %v275_v29 = vadd.f32 %v274_v27, %v273_v25 }
  0x55   : > { %v269_v30 = vrot.slane %v268_v28, 2  ;;  %v276_v31 = vrot.slane %v275_v29, 2 }
  0x57   : > { %v270_v32 = vadd.f32 %v269_v30, %v268_v28  ;;  %v277_v33 = vadd.f32 %v276_v31, %v275_v29 }
  0x59   : > { %v271_v34 = vrot.slane %v270_v32, 1  ;;  %v278_v35 = vrot.slane %v277_v33, 1 }
  0x5b   : > { %v272_v36 = vadd.f32 %v271_v34, %v270_v32  ;;  %v279_v37 = vadd.f32 %v278_v35, %v277_v33 }
  0x5d   : > { %v282_v38 = vrot.slane %v279_v37, 4 }
  0x5f   : > { %v283_v39 = vsel %vm237_vm0, %v272_v36, %v282_v38 }
  0x60   : > { %544 = vrcp.f32 %v283_v39  ;;  %v296_v42 = vand.u32 2147483648, %v283_v39  ;;  %vm290_vm1 = vweird.f32 %v283_v39  ;;  %v294_v44 = vand.u32 2147483647, %v283_v39 }
  0x62   : > { %v297_v46 = vor.u32 1.1754944e-38, %v296_v42  ;;  %vm295_vm4 = vcmp.eq.f32.partialorder %v294_v44, 8.507059e+37 }
  0x66   : > { %v545_v40 = vpop.eup %544 }
  0x67   : > { %v286_v41 = vmul.f32 %v545_v40, %v283_v39  ;;  %vm291_vm2 = vweird.f32 %v545_v40 }
  0x68   : > { %vm292_vm3 = vmor %vm290_vm1, %vm291_vm2 }
  0x69   : > { %v287_v43 = vsub.f32 1.0, %v286_v41 }
  0x6b   : > { %v288_v45 = vmul.f32 %v545_v40, %v287_v43 }
  0x6d   : > { %v289_v47 = vadd.f32 %v545_v40, %v288_v45 }
  0x6f   : > { %v293_v48 = vsel %vm292_vm3, %v545_v40, %v289_v47 }
  0x70   : > { %v298_v50 = vsel %vm295_vm4, %v297_v46, %v293_v48 }
  0x71   : > { %v299_v51 = vmul.f32 %v543_v21, %v298_v50 }
  0x73   : > { %v300_v52 = vsub.f32 %v299_v51, %v230_v49 }
  0x75   : > { %v301_v53 = vmul.f32 %v300_v52, %v300_v52 }
  0x77   : > { %310 = vst [vmem:[#allocation1] ss:$2 sm:$0xff] %v301_v53 }
  0x7e   : > { %v311_v54 = vld.sshfl [vmem:[#allocation1] sm:$0xff pattern:$0x75316420]  ;;  %v312_v55 = vld.sshfl [vmem:[#allocation1 + $0x8] sm:$0xff pattern:$0x75316420] }
  0x7f   : > { %v315_v56 = vsel %vm237_vm0, %v311_v54, 0.0  ;;  %v316_v57 = vsel %vm237_vm0, %v312_v55, 0.0 }
  0x80   : > { %v317_v58 = vadd.f32 %v316_v57, %v315_v56 }
  0x82   : > { %318 = vadd.xlane.f32.xlu0 %v317_v58 }
  0xf5   : > { %v319_v59 = vpop.xlane.xlu0 %318 }
  0xf6   : > { %v320_v60 = vrot.slane %v319_v59, 4 }
  0xf8   : > { %v321_v61 = vadd.f32 %v320_v60, %v319_v59 }
  0xfa   : > { %v322_v62 = vrot.slane %v321_v61, 2 }
  0xfc   : > { %v323_v63 = vadd.f32 %v322_v62, %v321_v61 }
  0xfe   : > { %v324_v0 = vrot.slane %v323_v63, 1 }
 0x100   : > { %v325_v1 = vadd.f32 %v324_v0, %v323_v63 }
 0x102   : > { %473 = vpush %v325_v1 }
 0x133   : > { %s474_s15 = spop %473 }
 0x134   : > { %v327_v2 = vstv %s474_s15 }
 0x135   : > { %329 = vst [vmem:[%s221_s6] sm:$0xff] %v327_v2 }
 0x136   : > { %633 = shalt.err (!%p630_p13)
}
 0x137   : > { %479 = dma.vmem_to_hbm [thread:$0]  (%p760_p9), %s344_s7, 128, %s346_s8, %s331_s16  }
 0x138 PF: > { %s357_s19 = sand.u32 1, %s672_s9   ;;  %p489_p0 = pnand %p456_p12, %p767_p11 }
 0x139   : > { %s358_s25 = scalar_lea.sflag [#allocation5], %s357_s19 }
 0x13a   : > { %p490_p1 = pneg %p489_p0 }
 0x13c   : > { %667 = dma.done.wait (%p490_p1), %s358_s25, 128  }
 0x13d   : > { %669 = vsyncadd (%p490_p1), %s358_s25, 4294967168  ;;  %s21_s14 = sadd.s32 1, %s692_s14   ;;  %s859_s9 = smov %s676_s10 }
 0x13e   : > { %p18_p2 = scmp.ge.s32.totalorder %s21_s14, 4   ;;  %s860_s10 = smov %s680_s11 }
 0x13f   : > { %s861_s11 = smov %s765_s23  ;;  %s862_s12 = smov %s688_s13 }
 0x140   : > { %s863_s13 = smov %s865_s17  ;;  %20 = sbr.rel (!%p18_p2) target bundleno = 8 (0x8), region = 94 }
 0x145   :  { %364 = vsyncpa [#allocation4], 1 }
 0x146   :  { %366 = vsyncpa [#allocation4 + $0x1], 1 }
 0x147   :  { %367 = vsyncpa [#allocation7], 1 }
 0x148   :  { %369 = vsyncpa [#allocation7 + $0x1], 1 }
 0x149   :  { %370 = vsyncpa [#allocation5], 1 }
 0x14a   :  { %372 = vsyncpa [#allocation5 + $0x1], 1 }

</bundles_post_ra>
